<compile_context>
chip_gen: v7x
topology: tpu7x:2x2x1
jax: 0.10.0
libtpu: 0.0.40
codegen_flags: <defaults>
</compile_context>

<pallas_src>
import functools

import jax
import jax.numpy as jnp
from jax import lax
from jax.experimental import pallas as pl
from jax.experimental.pallas import tpu as pltpu

LANES = 128      # vreg lane width
SUBLANES = 8     # f32 sublane granularity
HIDDEN = 20      # hidden units of denseI / denseII
N_ACC = 4        # independent f32 accumulator chains (f32 path)
GROUP = 5        # bf16 terms accumulated before widening to f32 (bf16 path)


def _default_compute_dtype():
    # bf16 VALU exists on v6e/v7x; v5e (and older) VPUs are f32-only.
    try:
        kind = jax.devices()[0].device_kind.lower()
    except Exception:
        return jnp.dtype(jnp.float32)
    if "v6" in kind or "v7" in kind:
        return jnp.dtype(jnp.bfloat16)
    return jnp.dtype(jnp.float32)


_DEFAULT_COMPUTE_DTYPE = _default_compute_dtype()


def _tree_sum(vals):
    vals = list(vals)
    while len(vals) > 1:
        nxt = [vals[i] + vals[i + 1] for i in range(0, len(vals) - 1, 2)]
        if len(vals) % 2:
            nxt.append(vals[-1])
        vals = nxt
    return vals[0]


def mlp_kernel(x_ref, w1_ref, b1_ref, w2_ref, b2_ref, o_ref, *,
               compute_dtype, chunk, unroll):
    # x_ref / o_ref: (block_rows, 128) f32 tiles in VMEM (lane dense).
    # w1_ref, b1_ref, w2_ref: (20,) f32 in SMEM;  b2_ref: (1,) f32 in SMEM.
    compute_dtype = jnp.dtype(compute_dtype)
    f32 = jnp.dtype(jnp.float32)

    # Hoist the 61 SMEM scalar reads out of the strip loop (they live in
    # sregs; the compiler may rematerialize/spill them as it sees fit).
    w1 = [w1_ref[j] for j in range(HIDDEN)]
    b1 = [b1_ref[j] for j in range(HIDDEN)]
    w2 = [w2_ref[j] for j in range(HIDDEN)]
    b2 = b2_ref[0]
    if compute_dtype != f32:
        w1 = [w.astype(compute_dtype) for w in w1]
        b1 = [b.astype(compute_dtype) for b in b1]
        w2 = [w.astype(compute_dtype) for w in w2]

    block_rows = x_ref.shape[0]
    n_chunks = block_rows // chunk

    def strip(c, carry):
        # Strip-mine: the whole 20-term chain for a (chunk, 128) slice stays
        # in vregs between ops, so vld/vst slots never gate the VALU.
        r0 = pl.multiple_of(c * chunk, chunk)
        xc = x_ref[pl.ds(r0, chunk), :]
        if compute_dtype != f32:
            xc = xc.astype(compute_dtype)

        if compute_dtype == f32:
            # f32 path (v5e has no bf16 VALU): round-robin over N_ACC
            # accumulators so the 20 dependent adds never serialize.
            accs = [jnp.zeros((chunk, LANES), f32) for _ in range(N_ACC)]
            for j in range(HIDDEN):
                t = jnp.maximum(xc * w1[j] + b1[j], 0.0) * w2[j]
                accs[j % N_ACC] = accs[j % N_ACC] + t
            acc = _tree_sum(accs)
        else:
            # bf16 path (v6e/v7x): per-term math in bf16, widen every
            # GROUP-term partial to f32; the group partials double as
            # independent accumulator chains.
            parts = []
            for g in range(0, HIDDEN, GROUP):
                p = None
                for j in range(g, min(g + GROUP, HIDDEN)):
                    t = jnp.maximum(xc * w1[j] + b1[j], 0.0) * w2[j]
                    p = t if p is None else p + t
                parts.append(p.astype(f32))
            acc = _tree_sum(parts)

        o_ref[pl.ds(r0, chunk), :] = (acc + b2).astype(o_ref.dtype)
        return carry

    lax.fori_loop(0, n_chunks, strip, 0, unroll=unroll)


def _pick_chunk(block_rows):
    for c in (32, 16, 8):           # 32 rows x 128 lanes f32 = 4 vregs
        if block_rows % c == 0:
            return c
    return block_rows               # unreachable: block_rows is a multiple of 8


@functools.partial(jax.jit, static_argnames=("block_rows", "compute_dtype"))
def _mynn_forward(x, w1, b1, w2, b2, *, block_rows, compute_dtype):
    n = x.shape[0]
    # Lane-dense (rows, 128) slab with rows a multiple of 8 sublanes: pad by at
    # most 1023 elements; when n % 1024 == 0 this is reshape-only (no pad, and
    # the trailing output slice is the identity).
    rows = pl.cdiv(n, SUBLANES * LANES) * SUBLANES
    n_padded = rows * LANES

    xf = x.reshape(-1)
    if n_padded != n:
        xf = jnp.pad(xf, (0, n_padded - n))
    x2d = xf.reshape(rows, LANES)

    # Block rows: big enough to amortize the ~0.35us/grid-step overhead, a
    # multiple of 8 sublanes, and capped so the batch axis spans >= 2 grid
    # steps whenever there is enough work (keeps v7x's second TC busy).
    br = max(SUBLANES, (min(block_rows, rows) // SUBLANES) * SUBLANES)
    if rows >= 2 * SUBLANES:
        br = min(br, max(SUBLANES, (rows // 2 // SUBLANES) * SUBLANES))
    grid = (pl.cdiv(rows, br),)     # ragged last block is masked by Pallas

    chunk = _pick_chunk(br)
    n_chunks = br // chunk
    unroll = max(1, min(4, n_chunks))

    smem = pl.BlockSpec(memory_space=pltpu.MemorySpace.SMEM)
    kern = functools.partial(mlp_kernel, compute_dtype=jnp.dtype(compute_dtype),
                             chunk=chunk, unroll=unroll)

    out2d = pl.pallas_call(
        kern,
        out_shape=jax.ShapeDtypeStruct((rows, LANES), jnp.float32),
        grid_spec=pltpu.PrefetchScalarGridSpec(
            num_scalar_prefetch=0,
            grid=grid,
            in_specs=[
                pl.BlockSpec((br, LANES), lambda i: (i, 0)),  # x tile (VMEM)
                smem,  # w1
                smem,  # b1
                smem,  # w2
                smem,  # b2
            ],
            out_specs=pl.BlockSpec((br, LANES), lambda i: (i, 0)),
        ),
        compiler_params=pltpu.CompilerParams(
            dimension_semantics=("parallel",),  # batch axis shards across TCs (v7x)
        ),
        cost_estimate=pl.CostEstimate(
            flops=(5 * HIDDEN + 1) * n_padded,
            transcendentals=0,
            bytes_accessed=8 * n_padded + 4 * (3 * HIDDEN + 1),
        ),
    )(x2d, w1, b1, w2, b2)

    out = out2d.reshape(-1)
    if n_padded != n:
        out = out[:n]
    return out.reshape(n, 1)


def mynn_forward(x, w1, b1, w2, b2, *, block_rows=2048, compute_dtype=None):
    """x: (N, 1) f32.  w1, b1, w2: (20,) f32.  b2: (1,) f32.  Returns (N, 1) f32."""
    if compute_dtype is None:
        compute_dtype = _DEFAULT_COMPUTE_DTYPE
    compute_dtype = jnp.dtype(compute_dtype)
    try:
        return _mynn_forward(x, w1, b1, w2, b2,
                             block_rows=block_rows, compute_dtype=compute_dtype)
    except Exception:
        # bf16 term-math is a throughput mode for v6e/v7x; if this toolchain
        # rejects the bf16 scalar/vector mix, fall back to the always-correct
        # f32 path instead of failing the forward pass.
        if compute_dtype != jnp.dtype(jnp.float32):
            return _mynn_forward(x, w1, b1, w2, b2, block_rows=block_rows,
                                 compute_dtype=jnp.dtype(jnp.float32))
        raise


def mynn_reference(x, w1, b1, w2, b2):
    h = jnp.maximum(x @ w1.reshape(1, HIDDEN) + b1.reshape(1, HIDDEN), 0.0)
    return h @ w2.reshape(HIDDEN, 1) + b2.reshape(1, 1)


if __name__ == "__main__":
    key = jax.random.PRNGKey(0)
    k_w1, k_b1, k_w2, k_b2 = jax.random.split(key, 4)

    # nn.Linear(1, 20) / nn.Linear(20, 1) parameters, stored flat since both
    # the 1->20 and 20->1 maps reduce to per-hidden-unit scalars.
    w1 = jax.random.normal(k_w1, (HIDDEN,), dtype=jnp.float32) * 0.5
    b1 = jax.random.normal(k_b1, (HIDDEN,), dtype=jnp.float32) * 0.1
    w2 = jax.random.normal(k_w2, (HIDDEN,), dtype=jnp.float32) * 0.5
    b2 = jax.random.normal(k_b2, (1,), dtype=jnp.float32) * 0.1

    # Case 1: the spec's torch.linspace(-5, 5, 1000).view(-1, 1).  N = 1000 is
    # not a multiple of 1024, so this exercises the <=1023-element tail pad.
    x1 = jnp.linspace(-5.0, 5.0, 1000, dtype=jnp.float32).reshape(-1, 1)
    out1 = jax.block_until_ready(
        mynn_forward(x1, w1, b1, w2, b2, compute_dtype=jnp.float32))
    ref1 = mynn_reference(x1, w1, b1, w2, b2)
    assert out1.shape == (1000, 1)
    assert jnp.allclose(out1, ref1, atol=1e-4, rtol=1e-5)

    # Case 2: multiple of 1024 (reshape-only fast path), small blocks so the
    # batch axis spans several grid steps (multi-step tiling / megacore path).
    x2 = jnp.linspace(-5.0, 5.0, 4096, dtype=jnp.float32).reshape(-1, 1)
    out2 = jax.block_until_ready(
        mynn_forward(x2, w1, b1, w2, b2, block_rows=8, compute_dtype=jnp.float32))
    ref2 = mynn_reference(x2, w1, b1, w2, b2)
    assert out2.shape == (4096, 1)
    assert jnp.allclose(out2, ref2, atol=1e-4, rtol=1e-5)

    # Case 3: default (auto) precision — bf16 term math on v6e/v7x (f32
    # partial accumulation, so a bf16-appropriate tolerance), f32 elsewhere.
    out3 = jax.block_until_ready(mynn_forward(x2, w1, b1, w2, b2))
    assert out3.shape == (4096, 1)
    if _DEFAULT_COMPUTE_DTYPE == jnp.dtype(jnp.float32):
        assert jnp.allclose(out3, ref2, atol=1e-4, rtol=1e-5)
    else:
        assert jnp.allclose(out3, ref2, atol=0.5, rtol=0.05)

    print("KERNEL_OK")
</pallas_src>

<mosaic_0001>
module attributes {stable_mosaic.version = 11 : i64} {
  func.func @mlp_kernel(%arg0: i32, %arg1: memref<8x128xf32, #tpu.memory_space<vmem>>, %arg2: memref<20xf32, #tpu.memory_space<smem>>, %arg3: memref<20xf32, #tpu.memory_space<smem>>, %arg4: memref<20xf32, #tpu.memory_space<smem>>, %arg5: memref<1xf32, #tpu.memory_space<smem>>, %arg6: memref<8x128xf32, #tpu.memory_space<vmem>>) attributes {dimension_semantics = [#tpu.dimension_semantics<parallel>], iteration_bounds = array<i64: 1>, scalar_prefetch = 0 : i64, scratch_operands = 0 : i64, tpu.core_type = #tpu.core_type<tc>, window_params = [{transform_indices = @transform_0, window_bounds = array<i64: 8, 128>}, {transform_indices = @transform_1, window_bounds = array<i64: 20>}, {transform_indices = @transform_2, window_bounds = array<i64: 20>}, {transform_indices = @transform_3, window_bounds = array<i64: 20>}, {transform_indices = @transform_4, window_bounds = array<i64: 1>}, {transform_indices = @transform_5, window_bounds = array<i64: 8, 128>}]} {
    %c0 = arith.constant 0 : index
    %0 = memref.load %arg2[%c0] : memref<20xf32, #tpu.memory_space<smem>>
    %c1 = arith.constant 1 : index
    %1 = memref.load %arg2[%c1] : memref<20xf32, #tpu.memory_space<smem>>
    %c2 = arith.constant 2 : index
    %2 = memref.load %arg2[%c2] : memref<20xf32, #tpu.memory_space<smem>>
    %c3 = arith.constant 3 : index
    %3 = memref.load %arg2[%c3] : memref<20xf32, #tpu.memory_space<smem>>
    %c4 = arith.constant 4 : index
    %4 = memref.load %arg2[%c4] : memref<20xf32, #tpu.memory_space<smem>>
    %c5 = arith.constant 5 : index
    %5 = memref.load %arg2[%c5] : memref<20xf32, #tpu.memory_space<smem>>
    %c6 = arith.constant 6 : index
    %6 = memref.load %arg2[%c6] : memref<20xf32, #tpu.memory_space<smem>>
    %c7 = arith.constant 7 : index
    %7 = memref.load %arg2[%c7] : memref<20xf32, #tpu.memory_space<smem>>
    %c8 = arith.constant 8 : index
    %8 = memref.load %arg2[%c8] : memref<20xf32, #tpu.memory_space<smem>>
    %c9 = arith.constant 9 : index
    %9 = memref.load %arg2[%c9] : memref<20xf32, #tpu.memory_space<smem>>
    %c10 = arith.constant 10 : index
    %10 = memref.load %arg2[%c10] : memref<20xf32, #tpu.memory_space<smem>>
    %c11 = arith.constant 11 : index
    %11 = memref.load %arg2[%c11] : memref<20xf32, #tpu.memory_space<smem>>
    %c12 = arith.constant 12 : index
    %12 = memref.load %arg2[%c12] : memref<20xf32, #tpu.memory_space<smem>>
    %c13 = arith.constant 13 : index
    %13 = memref.load %arg2[%c13] : memref<20xf32, #tpu.memory_space<smem>>
    %c14 = arith.constant 14 : index
    %14 = memref.load %arg2[%c14] : memref<20xf32, #tpu.memory_space<smem>>
    %c15 = arith.constant 15 : index
    %15 = memref.load %arg2[%c15] : memref<20xf32, #tpu.memory_space<smem>>
    %c16 = arith.constant 16 : index
    %16 = memref.load %arg2[%c16] : memref<20xf32, #tpu.memory_space<smem>>
    %c17 = arith.constant 17 : index
    %17 = memref.load %arg2[%c17] : memref<20xf32, #tpu.memory_space<smem>>
    %c18 = arith.constant 18 : index
    %18 = memref.load %arg2[%c18] : memref<20xf32, #tpu.memory_space<smem>>
    %c19 = arith.constant 19 : index
    %19 = memref.load %arg2[%c19] : memref<20xf32, #tpu.memory_space<smem>>
    %c0_0 = arith.constant 0 : index
    %20 = memref.load %arg3[%c0_0] : memref<20xf32, #tpu.memory_space<smem>>
    %c1_1 = arith.constant 1 : index
    %21 = memref.load %arg3[%c1_1] : memref<20xf32, #tpu.memory_space<smem>>
    %c2_2 = arith.constant 2 : index
    %22 = memref.load %arg3[%c2_2] : memref<20xf32, #tpu.memory_space<smem>>
    %c3_3 = arith.constant 3 : index
    %23 = memref.load %arg3[%c3_3] : memref<20xf32, #tpu.memory_space<smem>>
    %c4_4 = arith.constant 4 : index
    %24 = memref.load %arg3[%c4_4] : memref<20xf32, #tpu.memory_space<smem>>
    %c5_5 = arith.constant 5 : index
    %25 = memref.load %arg3[%c5_5] : memref<20xf32, #tpu.memory_space<smem>>
    %c6_6 = arith.constant 6 : index
    %26 = memref.load %arg3[%c6_6] : memref<20xf32, #tpu.memory_space<smem>>
    %c7_7 = arith.constant 7 : index
    %27 = memref.load %arg3[%c7_7] : memref<20xf32, #tpu.memory_space<smem>>
    %c8_8 = arith.constant 8 : index
    %28 = memref.load %arg3[%c8_8] : memref<20xf32, #tpu.memory_space<smem>>
    %c9_9 = arith.constant 9 : index
    %29 = memref.load %arg3[%c9_9] : memref<20xf32, #tpu.memory_space<smem>>
    %c10_10 = arith.constant 10 : index
    %30 = memref.load %arg3[%c10_10] : memref<20xf32, #tpu.memory_space<smem>>
    %c11_11 = arith.constant 11 : index
    %31 = memref.load %arg3[%c11_11] : memref<20xf32, #tpu.memory_space<smem>>
    %c12_12 = arith.constant 12 : index
    %32 = memref.load %arg3[%c12_12] : memref<20xf32, #tpu.memory_space<smem>>
    %c13_13 = arith.constant 13 : index
    %33 = memref.load %arg3[%c13_13] : memref<20xf32, #tpu.memory_space<smem>>
    %c14_14 = arith.constant 14 : index
    %34 = memref.load %arg3[%c14_14] : memref<20xf32, #tpu.memory_space<smem>>
    %c15_15 = arith.constant 15 : index
    %35 = memref.load %arg3[%c15_15] : memref<20xf32, #tpu.memory_space<smem>>
    %c16_16 = arith.constant 16 : index
    %36 = memref.load %arg3[%c16_16] : memref<20xf32, #tpu.memory_space<smem>>
    %c17_17 = arith.constant 17 : index
    %37 = memref.load %arg3[%c17_17] : memref<20xf32, #tpu.memory_space<smem>>
    %c18_18 = arith.constant 18 : index
    %38 = memref.load %arg3[%c18_18] : memref<20xf32, #tpu.memory_space<smem>>
    %c19_19 = arith.constant 19 : index
    %39 = memref.load %arg3[%c19_19] : memref<20xf32, #tpu.memory_space<smem>>
    %c0_20 = arith.constant 0 : index
    %40 = memref.load %arg4[%c0_20] : memref<20xf32, #tpu.memory_space<smem>>
    %c1_21 = arith.constant 1 : index
    %41 = memref.load %arg4[%c1_21] : memref<20xf32, #tpu.memory_space<smem>>
    %c2_22 = arith.constant 2 : index
    %42 = memref.load %arg4[%c2_22] : memref<20xf32, #tpu.memory_space<smem>>
    %c3_23 = arith.constant 3 : index
    %43 = memref.load %arg4[%c3_23] : memref<20xf32, #tpu.memory_space<smem>>
    %c4_24 = arith.constant 4 : index
    %44 = memref.load %arg4[%c4_24] : memref<20xf32, #tpu.memory_space<smem>>
    %c5_25 = arith.constant 5 : index
    %45 = memref.load %arg4[%c5_25] : memref<20xf32, #tpu.memory_space<smem>>
    %c6_26 = arith.constant 6 : index
    %46 = memref.load %arg4[%c6_26] : memref<20xf32, #tpu.memory_space<smem>>
    %c7_27 = arith.constant 7 : index
    %47 = memref.load %arg4[%c7_27] : memref<20xf32, #tpu.memory_space<smem>>
    %c8_28 = arith.constant 8 : index
    %48 = memref.load %arg4[%c8_28] : memref<20xf32, #tpu.memory_space<smem>>
    %c9_29 = arith.constant 9 : index
    %49 = memref.load %arg4[%c9_29] : memref<20xf32, #tpu.memory_space<smem>>
    %c10_30 = arith.constant 10 : index
    %50 = memref.load %arg4[%c10_30] : memref<20xf32, #tpu.memory_space<smem>>
    %c11_31 = arith.constant 11 : index
    %51 = memref.load %arg4[%c11_31] : memref<20xf32, #tpu.memory_space<smem>>
    %c12_32 = arith.constant 12 : index
    %52 = memref.load %arg4[%c12_32] : memref<20xf32, #tpu.memory_space<smem>>
    %c13_33 = arith.constant 13 : index
    %53 = memref.load %arg4[%c13_33] : memref<20xf32, #tpu.memory_space<smem>>
    %c14_34 = arith.constant 14 : index
    %54 = memref.load %arg4[%c14_34] : memref<20xf32, #tpu.memory_space<smem>>
    %c15_35 = arith.constant 15 : index
    %55 = memref.load %arg4[%c15_35] : memref<20xf32, #tpu.memory_space<smem>>
    %c16_36 = arith.constant 16 : index
    %56 = memref.load %arg4[%c16_36] : memref<20xf32, #tpu.memory_space<smem>>
    %c17_37 = arith.constant 17 : index
    %57 = memref.load %arg4[%c17_37] : memref<20xf32, #tpu.memory_space<smem>>
    %c18_38 = arith.constant 18 : index
    %58 = memref.load %arg4[%c18_38] : memref<20xf32, #tpu.memory_space<smem>>
    %c19_39 = arith.constant 19 : index
    %59 = memref.load %arg4[%c19_39] : memref<20xf32, #tpu.memory_space<smem>>
    %c0_40 = arith.constant 0 : index
    %60 = memref.load %arg5[%c0_40] : memref<1xf32, #tpu.memory_space<smem>>
    %c0_i32 = arith.constant 0 : i32
    %c8_i32 = arith.constant 8 : i32
    %61 = arith.muli %c0_i32, %c8_i32 : i32
    %62 = tpu.assume_multiple %61, 8 : i32
    %63 = arith.index_cast %62 : i32 to index
    %c0_41 = arith.constant 0 : index
    %64 = vector.load %arg1[%63, %c0_41] : memref<8x128xf32, #tpu.memory_space<vmem>>, vector<8x128xf32>
    %cst = arith.constant 0.000000e+00 : f32
    %65 = vector.broadcast %cst : f32 to vector<8x128xf32>
    %cst_42 = arith.constant 0.000000e+00 : f32
    %66 = vector.broadcast %cst_42 : f32 to vector<8x128xf32>
    %cst_43 = arith.constant 0.000000e+00 : f32
    %67 = vector.broadcast %cst_43 : f32 to vector<8x128xf32>
    %cst_44 = arith.constant 0.000000e+00 : f32
    %68 = vector.broadcast %cst_44 : f32 to vector<8x128xf32>
    %69 = vector.broadcast %0 : f32 to vector<8x128xf32>
    %70 = arith.mulf %64, %69 : vector<8x128xf32>
    %71 = vector.broadcast %20 : f32 to vector<8x128xf32>
    %72 = arith.addf %70, %71 : vector<8x128xf32>
    %cst_45 = arith.constant 0.000000e+00 : f32
    %73 = vector.broadcast %cst_45 : f32 to vector<8x128xf32>
    %74 = arith.maximumf %72, %73 : vector<8x128xf32>
    %75 = vector.broadcast %40 : f32 to vector<8x128xf32>
    %76 = arith.mulf %74, %75 : vector<8x128xf32>
    %77 = arith.addf %65, %76 : vector<8x128xf32>
    %78 = vector.broadcast %1 : f32 to vector<8x128xf32>
    %79 = arith.mulf %64, %78 : vector<8x128xf32>
    %80 = vector.broadcast %21 : f32 to vector<8x128xf32>
    %81 = arith.addf %79, %80 : vector<8x128xf32>
    %cst_46 = arith.constant 0.000000e+00 : f32
    %82 = vector.broadcast %cst_46 : f32 to vector<8x128xf32>
    %83 = arith.maximumf %81, %82 : vector<8x128xf32>
    %84 = vector.broadcast %41 : f32 to vector<8x128xf32>
    %85 = arith.mulf %83, %84 : vector<8x128xf32>
    %86 = arith.addf %66, %85 : vector<8x128xf32>
    %87 = vector.broadcast %2 : f32 to vector<8x128xf32>
    %88 = arith.mulf %64, %87 : vector<8x128xf32>
    %89 = vector.broadcast %22 : f32 to vector<8x128xf32>
    %90 = arith.addf %88, %89 : vector<8x128xf32>
    %cst_47 = arith.constant 0.000000e+00 : f32
    %91 = vector.broadcast %cst_47 : f32 to vector<8x128xf32>
    %92 = arith.maximumf %90, %91 : vector<8x128xf32>
    %93 = vector.broadcast %42 : f32 to vector<8x128xf32>
    %94 = arith.mulf %92, %93 : vector<8x128xf32>
    %95 = arith.addf %67, %94 : vector<8x128xf32>
    %96 = vector.broadcast %3 : f32 to vector<8x128xf32>
    %97 = arith.mulf %64, %96 : vector<8x128xf32>
    %98 = vector.broadcast %23 : f32 to vector<8x128xf32>
    %99 = arith.addf %97, %98 : vector<8x128xf32>
    %cst_48 = arith.constant 0.000000e+00 : f32
    %100 = vector.broadcast %cst_48 : f32 to vector<8x128xf32>
    %101 = arith.maximumf %99, %100 : vector<8x128xf32>
    %102 = vector.broadcast %43 : f32 to vector<8x128xf32>
    %103 = arith.mulf %101, %102 : vector<8x128xf32>
    %104 = arith.addf %68, %103 : vector<8x128xf32>
    %105 = vector.broadcast %4 : f32 to vector<8x128xf32>
    %106 = arith.mulf %64, %105 : vector<8x128xf32>
    %107 = vector.broadcast %24 : f32 to vector<8x128xf32>
    %108 = arith.addf %106, %107 : vector<8x128xf32>
    %cst_49 = arith.constant 0.000000e+00 : f32
    %109 = vector.broadcast %cst_49 : f32 to vector<8x128xf32>
    %110 = arith.maximumf %108, %109 : vector<8x128xf32>
    %111 = vector.broadcast %44 : f32 to vector<8x128xf32>
    %112 = arith.mulf %110, %111 : vector<8x128xf32>
    %113 = arith.addf %77, %112 : vector<8x128xf32>
    %114 = vector.broadcast %5 : f32 to vector<8x128xf32>
    %115 = arith.mulf %64, %114 : vector<8x128xf32>
    %116 = vector.broadcast %25 : f32 to vector<8x128xf32>
    %117 = arith.addf %115, %116 : vector<8x128xf32>
    %cst_50 = arith.constant 0.000000e+00 : f32
    %118 = vector.broadcast %cst_50 : f32 to vector<8x128xf32>
    %119 = arith.maximumf %117, %118 : vector<8x128xf32>
    %120 = vector.broadcast %45 : f32 to vector<8x128xf32>
    %121 = arith.mulf %119, %120 : vector<8x128xf32>
    %122 = arith.addf %86, %121 : vector<8x128xf32>
    %123 = vector.broadcast %6 : f32 to vector<8x128xf32>
    %124 = arith.mulf %64, %123 : vector<8x128xf32>
    %125 = vector.broadcast %26 : f32 to vector<8x128xf32>
    %126 = arith.addf %124, %125 : vector<8x128xf32>
    %cst_51 = arith.constant 0.000000e+00 : f32
    %127 = vector.broadcast %cst_51 : f32 to vector<8x128xf32>
    %128 = arith.maximumf %126, %127 : vector<8x128xf32>
    %129 = vector.broadcast %46 : f32 to vector<8x128xf32>
    %130 = arith.mulf %128, %129 : vector<8x128xf32>
    %131 = arith.addf %95, %130 : vector<8x128xf32>
    %132 = vector.broadcast %7 : f32 to vector<8x128xf32>
    %133 = arith.mulf %64, %132 : vector<8x128xf32>
    %134 = vector.broadcast %27 : f32 to vector<8x128xf32>
    %135 = arith.addf %133, %134 : vector<8x128xf32>
    %cst_52 = arith.constant 0.000000e+00 : f32
    %136 = vector.broadcast %cst_52 : f32 to vector<8x128xf32>
    %137 = arith.maximumf %135, %136 : vector<8x128xf32>
    %138 = vector.broadcast %47 : f32 to vector<8x128xf32>
    %139 = arith.mulf %137, %138 : vector<8x128xf32>
    %140 = arith.addf %104, %139 : vector<8x128xf32>
    %141 = vector.broadcast %8 : f32 to vector<8x128xf32>
    %142 = arith.mulf %64, %141 : vector<8x128xf32>
    %143 = vector.broadcast %28 : f32 to vector<8x128xf32>
    %144 = arith.addf %142, %143 : vector<8x128xf32>
    %cst_53 = arith.constant 0.000000e+00 : f32
    %145 = vector.broadcast %cst_53 : f32 to vector<8x128xf32>
    %146 = arith.maximumf %144, %145 : vector<8x128xf32>
    %147 = vector.broadcast %48 : f32 to vector<8x128xf32>
    %148 = arith.mulf %146, %147 : vector<8x128xf32>
    %149 = arith.addf %113, %148 : vector<8x128xf32>
    %150 = vector.broadcast %9 : f32 to vector<8x128xf32>
    %151 = arith.mulf %64, %150 : vector<8x128xf32>
    %152 = vector.broadcast %29 : f32 to vector<8x128xf32>
    %153 = arith.addf %151, %152 : vector<8x128xf32>
    %cst_54 = arith.constant 0.000000e+00 : f32
    %154 = vector.broadcast %cst_54 : f32 to vector<8x128xf32>
    %155 = arith.maximumf %153, %154 : vector<8x128xf32>
    %156 = vector.broadcast %49 : f32 to vector<8x128xf32>
    %157 = arith.mulf %155, %156 : vector<8x128xf32>
    %158 = arith.addf %122, %157 : vector<8x128xf32>
    %159 = vector.broadcast %10 : f32 to vector<8x128xf32>
    %160 = arith.mulf %64, %159 : vector<8x128xf32>
    %161 = vector.broadcast %30 : f32 to vector<8x128xf32>
    %162 = arith.addf %160, %161 : vector<8x128xf32>
    %cst_55 = arith.constant 0.000000e+00 : f32
    %163 = vector.broadcast %cst_55 : f32 to vector<8x128xf32>
    %164 = arith.maximumf %162, %163 : vector<8x128xf32>
    %165 = vector.broadcast %50 : f32 to vector<8x128xf32>
    %166 = arith.mulf %164, %165 : vector<8x128xf32>
    %167 = arith.addf %131, %166 : vector<8x128xf32>
    %168 = vector.broadcast %11 : f32 to vector<8x128xf32>
    %169 = arith.mulf %64, %168 : vector<8x128xf32>
    %170 = vector.broadcast %31 : f32 to vector<8x128xf32>
    %171 = arith.addf %169, %170 : vector<8x128xf32>
    %cst_56 = arith.constant 0.000000e+00 : f32
    %172 = vector.broadcast %cst_56 : f32 to vector<8x128xf32>
    %173 = arith.maximumf %171, %172 : vector<8x128xf32>
    %174 = vector.broadcast %51 : f32 to vector<8x128xf32>
    %175 = arith.mulf %173, %174 : vector<8x128xf32>
    %176 = arith.addf %140, %175 : vector<8x128xf32>
    %177 = vector.broadcast %12 : f32 to vector<8x128xf32>
    %178 = arith.mulf %64, %177 : vector<8x128xf32>
    %179 = vector.broadcast %32 : f32 to vector<8x128xf32>
    %180 = arith.addf %178, %179 : vector<8x128xf32>
    %cst_57 = arith.constant 0.000000e+00 : f32
    %181 = vector.broadcast %cst_57 : f32 to vector<8x128xf32>
    %182 = arith.maximumf %180, %181 : vector<8x128xf32>
    %183 = vector.broadcast %52 : f32 to vector<8x128xf32>
    %184 = arith.mulf %182, %183 : vector<8x128xf32>
    %185 = arith.addf %149, %184 : vector<8x128xf32>
    %186 = vector.broadcast %13 : f32 to vector<8x128xf32>
    %187 = arith.mulf %64, %186 : vector<8x128xf32>
    %188 = vector.broadcast %33 : f32 to vector<8x128xf32>
    %189 = arith.addf %187, %188 : vector<8x128xf32>
    %cst_58 = arith.constant 0.000000e+00 : f32
    %190 = vector.broadcast %cst_58 : f32 to vector<8x128xf32>
    %191 = arith.maximumf %189, %190 : vector<8x128xf32>
    %192 = vector.broadcast %53 : f32 to vector<8x128xf32>
    %193 = arith.mulf %191, %192 : vector<8x128xf32>
    %194 = arith.addf %158, %193 : vector<8x128xf32>
    %195 = vector.broadcast %14 : f32 to vector<8x128xf32>
    %196 = arith.mulf %64, %195 : vector<8x128xf32>
    %197 = vector.broadcast %34 : f32 to vector<8x128xf32>
    %198 = arith.addf %196, %197 : vector<8x128xf32>
    %cst_59 = arith.constant 0.000000e+00 : f32
    %199 = vector.broadcast %cst_59 : f32 to vector<8x128xf32>
    %200 = arith.maximumf %198, %199 : vector<8x128xf32>
    %201 = vector.broadcast %54 : f32 to vector<8x128xf32>
    %202 = arith.mulf %200, %201 : vector<8x128xf32>
    %203 = arith.addf %167, %202 : vector<8x128xf32>
    %204 = vector.broadcast %15 : f32 to vector<8x128xf32>
    %205 = arith.mulf %64, %204 : vector<8x128xf32>
    %206 = vector.broadcast %35 : f32 to vector<8x128xf32>
    %207 = arith.addf %205, %206 : vector<8x128xf32>
    %cst_60 = arith.constant 0.000000e+00 : f32
    %208 = vector.broadcast %cst_60 : f32 to vector<8x128xf32>
    %209 = arith.maximumf %207, %208 : vector<8x128xf32>
    %210 = vector.broadcast %55 : f32 to vector<8x128xf32>
    %211 = arith.mulf %209, %210 : vector<8x128xf32>
    %212 = arith.addf %176, %211 : vector<8x128xf32>
    %213 = vector.broadcast %16 : f32 to vector<8x128xf32>
    %214 = arith.mulf %64, %213 : vector<8x128xf32>
    %215 = vector.broadcast %36 : f32 to vector<8x128xf32>
    %216 = arith.addf %214, %215 : vector<8x128xf32>
    %cst_61 = arith.constant 0.000000e+00 : f32
    %217 = vector.broadcast %cst_61 : f32 to vector<8x128xf32>
    %218 = arith.maximumf %216, %217 : vector<8x128xf32>
    %219 = vector.broadcast %56 : f32 to vector<8x128xf32>
    %220 = arith.mulf %218, %219 : vector<8x128xf32>
    %221 = arith.addf %185, %220 : vector<8x128xf32>
    %222 = vector.broadcast %17 : f32 to vector<8x128xf32>
    %223 = arith.mulf %64, %222 : vector<8x128xf32>
    %224 = vector.broadcast %37 : f32 to vector<8x128xf32>
    %225 = arith.addf %223, %224 : vector<8x128xf32>
    %cst_62 = arith.constant 0.000000e+00 : f32
    %226 = vector.broadcast %cst_62 : f32 to vector<8x128xf32>
    %227 = arith.maximumf %225, %226 : vector<8x128xf32>
    %228 = vector.broadcast %57 : f32 to vector<8x128xf32>
    %229 = arith.mulf %227, %228 : vector<8x128xf32>
    %230 = arith.addf %194, %229 : vector<8x128xf32>
    %231 = vector.broadcast %18 : f32 to vector<8x128xf32>
    %232 = arith.mulf %64, %231 : vector<8x128xf32>
    %233 = vector.broadcast %38 : f32 to vector<8x128xf32>
    %234 = arith.addf %232, %233 : vector<8x128xf32>
    %cst_63 = arith.constant 0.000000e+00 : f32
    %235 = vector.broadcast %cst_63 : f32 to vector<8x128xf32>
    %236 = arith.maximumf %234, %235 : vector<8x128xf32>
    %237 = vector.broadcast %58 : f32 to vector<8x128xf32>
    %238 = arith.mulf %236, %237 : vector<8x128xf32>
    %239 = arith.addf %203, %238 : vector<8x128xf32>
    %240 = vector.broadcast %19 : f32 to vector<8x128xf32>
    %241 = arith.mulf %64, %240 : vector<8x128xf32>
    %242 = vector.broadcast %39 : f32 to vector<8x128xf32>
    %243 = arith.addf %241, %242 : vector<8x128xf32>
    %cst_64 = arith.constant 0.000000e+00 : f32
    %244 = vector.broadcast %cst_64 : f32 to vector<8x128xf32>
    %245 = arith.maximumf %243, %244 : vector<8x128xf32>
    %246 = vector.broadcast %59 : f32 to vector<8x128xf32>
    %247 = arith.mulf %245, %246 : vector<8x128xf32>
    %248 = arith.addf %212, %247 : vector<8x128xf32>
    %249 = arith.addf %221, %230 : vector<8x128xf32>
    %250 = arith.addf %239, %248 : vector<8x128xf32>
    %251 = arith.addf %249, %250 : vector<8x128xf32>
    %252 = vector.broadcast %60 : f32 to vector<8x128xf32>
    %253 = arith.addf %251, %252 : vector<8x128xf32>
    %254 = arith.index_cast %62 : i32 to index
    %c0_65 = arith.constant 0 : index
    %255 = vector.load %arg6[%254, %c0_65] : memref<8x128xf32, #tpu.memory_space<vmem>>, vector<8x128xf32>
    tpu.vector_store %arg6[%254, %c0_65], %253 {strides = array<i32>} : memref<8x128xf32, #tpu.memory_space<vmem>>, vector<8x128xf32>,
    %c1_i32 = arith.constant 1 : i32
    return
  }
  func.func @transform_0(%arg0: i32) -> (i32, i32) {
    %c0_i32 = arith.constant 0 : i32
    %c0_i32_0 = arith.constant 0 : i32
    return %arg0, %c0_i32 : i32, i32
  }
  func.func @transform_1(%arg0: i32) -> i32 {
    %c0_i32 = arith.constant 0 : i32
    %c0_i32_0 = arith.constant 0 : i32
    return %c0_i32 : i32
  }
  func.func @transform_2(%arg0: i32) -> i32 {
    %c0_i32 = arith.constant 0 : i32
    %c0_i32_0 = arith.constant 0 : i32
    return %c0_i32 : i32
  }
  func.func @transform_3(%arg0: i32) -> i32 {
    %c0_i32 = arith.constant 0 : i32
    %c0_i32_0 = arith.constant 0 : i32
    return %c0_i32 : i32
  }
  func.func @transform_4(%arg0: i32) -> i32 {
    %c0_i32 = arith.constant 0 : i32
    %c0_i32_0 = arith.constant 0 : i32
    return %c0_i32 : i32
  }
  func.func @transform_5(%arg0: i32) -> (i32, i32) {
    %c0_i32 = arith.constant 0 : i32
    %c0_i32_0 = arith.constant 0 : i32
    return %arg0, %c0_i32 : i32, i32
  }
}

</mosaic_0001>

<bundles_post_ra>
// kernel: _mynn_forward.1
= control target key start
LH: loop header
LB: loop body
LE: loop exit
PB: predicated region body
PF: predicated region fallthrough
CT: control target
= control target key end

     0   :  { %11 = vsyncpa [#allocation5], 0  ;;  %s694_s0 = inlined_call_operand.vmem [shape: f32[8,128], index: 0, kind: input, shape index: {}]   ;;  %s695_s1 = inlined_call_operand.vmem [shape: f32[20], index: 1, kind: input, shape index: {}]   ;;  %s696_s2 = inlined_call_operand.vmem [shape: f32[20], index: 2, kind: input, shape index: {}]   ;;  %s697_s3 = inlined_call_operand.vmem [shape: f32[20], index: 3, kind: input, shape index: {}]   ;;  %s698_s4 = inlined_call_operand.<no memory space> [shape: f32[1], index: 4, kind: input, shape index: {}]   ;;  %s699_s5 = inlined_call_operand.hbm [shape: f32[8,128], index: 5, kind: output, shape index: {}]  }
   0x1   :  { %12 = vsyncpa [#allocation7], 0  ;;  %s32_s20 = sshll.u32 %s696_s2, 4  ;;  %s33_s20 = int_to_ptr.vmem [resolvable:$true] %s32_s20 }
   0x2   :  { %13 = vsyncpa [#allocation4], 0  ;;  %s22_s23 = sshll.u32 %s695_s1, 4  ;;  %s363_s24 = scalar_lea.vmem %s33_s20, 16  ;;  %s23_s23 = int_to_ptr.vmem [resolvable:$true] %s22_s23 }
   0x3   :  { %p364_p0 = scmp.ne.s32.totalorder %s33_s20, %s363_s24  ;;  %p368_p1 = scmp.lt.s32.totalorder %s33_s20, %s33_s20 }
   0x4   :  { %p369_p2 = scmp.lt.s32.totalorder %s363_s24, %s363_s24 }
   0x6   :  { %p370_p3 = por %p369_p2, %p368_p1 }
   0x8   :  { %p371_p4 = pnand %p370_p3, %p364_p0 }
   0xa   :  { %374 = shalt.err (!%p371_p4)
}
   0xb   :  { %s427_s25 = smov [#allocation6]   ;;  %s375_s26 = scalar_lea.vmem %s23_s23, 16 }
   0xc   :  { %35 = dma.vmem_to_smem %s33_s20, 16, %s427_s25, [#allocation7]  }
   0xd   :  { %p376_p5 = scmp.ne.s32.totalorder %s23_s23, %s375_s26  ;;  %p380_p6 = scmp.lt.s32.totalorder %s23_s23, %s23_s23 }
   0xe   :  { %p381_p7 = scmp.lt.s32.totalorder %s375_s26, %s375_s26 }
  0x10   :  { %p382_p8 = por %p381_p7, %p380_p6 }
  0x12   :  { %p383_p9 = pnand %p382_p8, %p376_p5 }
  0x14   :  { %386 = shalt.err (!%p383_p9)
}
  0x15   :  { %s428_s2 = smov [#allocation3]   ;;  %s42_s28 = sshll.u32 %s697_s3, 4  ;;  %s43_s28 = int_to_ptr.vmem [resolvable:$true] %s42_s28 }
  0x16   :  { %25 = dma.vmem_to_smem %s23_s23, 16, %s428_s2, [#allocation5]  }
  0x17   :  { %s387_s29 = scalar_lea.vmem %s43_s28, 16  ;;  %p392_p11 = scmp.lt.s32.totalorder %s43_s28, %s43_s28 }
  0x18   :  { %p388_p10 = scmp.ne.s32.totalorder %s43_s28, %s387_s29  ;;  %p393_p12 = scmp.lt.s32.totalorder %s387_s29, %s387_s29 }
  0x1a   :  { %p394_p13 = por %p393_p12, %p392_p11 }
  0x1c   :  { %p395_p0 = pnand %p394_p13, %p388_p10 }
  0x1e   :  { %398 = shalt.err (!%p395_p0)
}
  0x1f   :  { %s429_s30 = smov [#allocation8]  }
  0x20   :  { %45 = dma.vmem_to_smem %s43_s28, 16, %s429_s30, [#allocation7]  }
  0x21   :  { %421 = dma.done.wait [#allocation5], 16  }
  0x22   :  { %422 = vsyncadd [#allocation5], 4294967280 }
  0x23   :  { %423 = dma.done.wait [#allocation7], 32  }
  0x24   :  { %424 = vsyncadd [#allocation7], 4294967264 }
  0x25   :  { %57 = sfence }
  0x26   :  { %s58_s6 = sld [smem:[#allocation3]]  ;;  %s302_s7 = sld [smem:[#allocation3 + $0x1]]  ;;  %v489_v0 = vld [vmem:[%s694_s0] sm:$0xff] }
  0x27   :  { %s303_s8 = sld [smem:[#allocation3 + $0x2]]  ;;  %s304_s9 = sld [smem:[#allocation3 + $0x3]] }
  0x28   :  { %s470_s3 = sld [smem:[#allocation3 + $0x4]]  ;;  %s472_s10 = sld [smem:[#allocation3 + $0x5]] }
  0x29   :  { %s474_s11 = sld [smem:[#allocation3 + $0x6]]  ;;  %s476_s12 = sld [smem:[#allocation3 + $0x7]] }
  0x2a   :  { %s478_s13 = sld [smem:[#allocation3 + $0x8]]  ;;  %s480_s14 = sld [smem:[#allocation3 + $0x9]] }
  0x2b   :  { %s482_s15 = sld [smem:[#allocation3 + $0xa]]  ;;  %s484_s16 = sld [smem:[#allocation3 + $0xb]] }
  0x2c   :  { %s491_s19 = sld [smem:[#allocation3 + $0xc]]  ;;  %s493_s20 = sld [smem:[#allocation3 + $0xd]]  ;;  %v120_v1 = vstv %s58_s6  ;;  %v128_v2 = vstv %s302_s7 }
  0x2d   :  { %s495_s21 = sld [smem:[#allocation3 + $0xe]]  ;;  %s497_s22 = sld [smem:[#allocation3 + $0xf]]  ;;  %v136_v3 = vstv %s303_s8  ;;  %v144_v4 = vstv %s304_s9  ;;  %v121_v5 = vmul.f32 %v120_v1, %v489_v0  ;;  %v129_v6 = vmul.f32 %v128_v2, %v489_v0 }
  0x2e   :  { %s499_s23 = sld [smem:[#allocation3 + $0x10]]  ;;  %s501_s24 = sld [smem:[#allocation3 + $0x11]]  ;;  %v152_v7 = vstv %s470_s3  ;;  %v160_v8 = vstv %s472_s10  ;;  %v137_v9 = vmul.f32 %v136_v3, %v489_v0  ;;  %v145_v10 = vmul.f32 %v144_v4, %v489_v0 }
  0x2f   :  { %s507_s0 = sld [smem:[#allocation3 + $0x12]]  ;;  %s509_s25 = sld [smem:[#allocation3 + $0x13]]  ;;  %v168_v11 = vstv %s474_s11  ;;  %v176_v12 = vstv %s476_s12  ;;  %v153_v13 = vmul.f32 %v152_v7, %v489_v0  ;;  %v161_v14 = vmul.f32 %v160_v8, %v489_v0 }
  0x30   :  { %s515_s26 = sld [smem:[#allocation6]]  ;;  %s517_s2 = sld [smem:[#allocation6 + $0x1]]  ;;  %v184_v15 = vstv %s478_s13  ;;  %v192_v16 = vstv %s480_s14  ;;  %v169_v17 = vmul.f32 %v168_v11, %v489_v0  ;;  %v177_v18 = vmul.f32 %v176_v12, %v489_v0 }
  0x31   :  { %s523_s1 = sld [smem:[#allocation6 + $0x2]]  ;;  %s525_s27 = sld [smem:[#allocation6 + $0x3]]  ;;  %v200_v19 = vstv %s482_s15  ;;  %v208_v20 = vstv %s484_s16  ;;  %v185_v21 = vmul.f32 %v184_v15, %v489_v0  ;;  %v193_v22 = vmul.f32 %v192_v16, %v489_v0 }
  0x32   :  { %s531_s28 = sld [smem:[#allocation6 + $0x4]]  ;;  %s533_s29 = sld [smem:[#allocation6 + $0x5]]  ;;  %v216_v23 = vstv %s491_s19  ;;  %v224_v24 = vstv %s493_s20  ;;  %v201_v25 = vmul.f32 %v200_v19, %v489_v0  ;;  %v209_v26 = vmul.f32 %v208_v20, %v489_v0 }
  0x33   :  { %s539_s30 = sld [smem:[#allocation6 + $0x6]]  ;;  %s541_s6 = sld [smem:[#allocation6 + $0x7]]  ;;  %v232_v27 = vstv %s495_s21  ;;  %v240_v28 = vstv %s497_s22  ;;  %v217_v29 = vmul.f32 %v216_v23, %v489_v0  ;;  %v225_v30 = vmul.f32 %v224_v24, %v489_v0 }
  0x34   :  { %s547_s7 = sld [smem:[#allocation6 + $0x8]]  ;;  %s549_s8 = sld [smem:[#allocation6 + $0x9]]  ;;  %v248_v31 = vstv %s499_s23  ;;  %v256_v32 = vstv %s501_s24  ;;  %v560_v33 = vmul.f32 %v232_v27, %v489_v0  ;;  %v563_v34 = vmul.f32 %v240_v28, %v489_v0 }
  0x35   :  { %s555_s9 = sld [smem:[#allocation6 + $0xa]]  ;;  %s557_s3 = sld [smem:[#allocation6 + $0xb]]  ;;  %v566_v35 = vmul.f32 %v248_v31, %v489_v0  ;;  %v569_v36 = vmul.f32 %v256_v32, %v489_v0  ;;  %v264_v39 = vstv %s507_s0  ;;  %v272_v40 = vstv %s509_s25 }
  0x36   :  { %s571_s10 = sld [smem:[#allocation6 + $0xc]]  ;;  %s573_s11 = sld [smem:[#allocation6 + $0xd]]  ;;  %v122_v37 = vstv %s515_s26  ;;  %v130_v38 = vstv %s517_s2 }
  0x37   :  { %v123_v41 = vadd.f32 %v122_v37, %v121_v5  ;;  %v131_v42 = vadd.f32 %v130_v38, %v129_v6  ;;  %v138_v43 = vstv %s523_s1  ;;  %v146_v44 = vstv %s525_s27  ;;  %s583_s12 = sld [smem:[#allocation8]]  ;;  %s585_s13 = sld [smem:[#allocation8 + $0x1]] }
  0x38   :  { %v139_v45 = vadd.f32 %v138_v43, %v137_v9  ;;  %v147_v46 = vadd.f32 %v146_v44, %v145_v10  ;;  %v154_v47 = vstv %s531_s28  ;;  %v162_v48 = vstv %s533_s29  ;;  %s589_s14 = sld [smem:[#allocation8 + $0x2]]  ;;  %s591_s15 = sld [smem:[#allocation8 + $0x3]] }
  0x39   :  { %v124_v49 = vmax.f32 %v123_v41, 0.0  ;;  %v132_v50 = vmax.f32 %v131_v42, 0.0  ;;  %v155_v51 = vadd.f32 %v154_v47, %v153_v13  ;;  %v163_v52 = vadd.f32 %v162_v48, %v161_v14  ;;  %s593_s16 = sld [smem:[#allocation8 + $0x4]]  ;;  %s595_s17 = sld [smem:[#allocation8 + $0x5]] }
  0x3a   :  { %v140_v53 = vmax.f32 %v139_v45, 0.0  ;;  %v148_v54 = vmax.f32 %v147_v46, 0.0  ;;  %v170_v55 = vstv %s539_s30  ;;  %v178_v56 = vstv %s541_s6  ;;  %s601_s18 = sld [smem:[#allocation8 + $0x6]]  ;;  %s603_s19 = sld [smem:[#allocation8 + $0x7]] }
  0x3b   :  { %v156_v57 = vmax.f32 %v155_v51, 0.0  ;;  %v164_v58 = vmax.f32 %v163_v52, 0.0  ;;  %v171_v59 = vadd.f32 %v170_v55, %v169_v17  ;;  %v179_v60 = vadd.f32 %v178_v56, %v177_v18  ;;  %s605_s20 = sld [smem:[#allocation8 + $0x8]]  ;;  %s607_s21 = sld [smem:[#allocation8 + $0x9]] }
  0x3c   :  { %v186_v61 = vstv %s547_s7  ;;  %v194_v62 = vstv %s549_s8  ;;  %v202_v63 = vstv %s555_s9  ;;  %v210_v1 = vstv %s557_s3  ;;  %s611_s22 = sld [smem:[#allocation8 + $0xa]]  ;;  %s613_s23 = sld [smem:[#allocation8 + $0xb]] }
  0x3d   :  { %v172_v2 = vmax.f32 %v171_v59, 0.0  ;;  %v180_v3 = vmax.f32 %v179_v60, 0.0  ;;  %v187_v4 = vadd.f32 %v186_v61, %v185_v21  ;;  %v195_v5 = vadd.f32 %v194_v62, %v193_v22  ;;  %s615_s24 = sld [smem:[#allocation8 + $0xc]]  ;;  %s617_s26 = sld [smem:[#allocation8 + $0xd]] }
  0x3e   :  { %v203_v6 = vadd.f32 %v202_v63, %v201_v25  ;;  %v211_v7 = vadd.f32 %v210_v1, %v209_v26  ;;  %v218_v8 = vstv %s571_s10  ;;  %v226_v9 = vstv %s573_s11  ;;  %s621_s2 = sld [smem:[#allocation6 + $0xe]]  ;;  %s625_s1 = sld [smem:[#allocation6 + $0xf]] }
  0x3f   :  { %v188_v10 = vmax.f32 %v187_v4, 0.0  ;;  %v196_v11 = vmax.f32 %v195_v5, 0.0  ;;  %v219_v12 = vadd.f32 %v218_v8, %v217_v29  ;;  %v227_v13 = vadd.f32 %v226_v9, %v225_v30  ;;  %s629_s27 = sld [smem:[#allocation6 + $0x10]]  ;;  %s631_s28 = sld [smem:[#allocation8 + $0xe]] }
  0x40   :  { %v125_v14 = vstv %s583_s12  ;;  %v133_v15 = vstv %s585_s13  ;;  %v204_v16 = vmax.f32 %v203_v6, 0.0  ;;  %v212_v17 = vmax.f32 %v211_v7, 0.0  ;;  %s635_s29 = sld [smem:[#allocation8 + $0xf]]  ;;  %s637_s30 = sld [smem:[#allocation8 + $0x10]] }
  0x41   :  { %v126_v18 = vmul.f32 %v125_v14, %v124_v49  ;;  %v134_v19 = vmul.f32 %v133_v15, %v132_v50  ;;  %v141_v20 = vstv %s589_s14  ;;  %v149_v21 = vstv %s591_s15  ;;  %s641_s6 = sld [smem:[#allocation6 + $0x11]]  ;;  %s643_s7 = sld [smem:[#allocation6 + $0x12]] }
  0x42   :  { %v142_v22 = vmul.f32 %v141_v20, %v140_v53  ;;  %v150_v23 = vmul.f32 %v149_v21, %v148_v54  ;;  %v157_v24 = vstv %s593_s16  ;;  %v165_v25 = vstv %s595_s17  ;;  %s645_s8 = sld [smem:[#allocation6 + $0x13]]  ;;  %s649_s9 = sld [smem:[#allocation8 + $0x11]] }
  0x43   :  { %v158_v26 = vmul.f32 %v157_v24, %v156_v57  ;;  %v166_v27 = vmul.f32 %v165_v25, %v164_v58  ;;  %v173_v28 = vstv %s601_s18  ;;  %v181_v29 = vstv %s603_s19  ;;  %s651_s3 = sld [smem:[#allocation8 + $0x12]]  ;;  %s662_s10 = sld [smem:[#allocation8 + $0x13]] }
  0x44   :  { %v174_v30 = vmul.f32 %v173_v28, %v172_v2  ;;  %v182_v31 = vmul.f32 %v181_v29, %v180_v3  ;;  %v189_v32 = vstv %s605_s20  ;;  %v197_v37 = vstv %s607_s21  ;;  %s430_s11 = smov [#allocation9]  }
  0x45   :  { %v159_v38 = vadd.f32 %v158_v26, %v126_v18  ;;  %v167_v41 = vadd.f32 %v166_v27, %v134_v19  ;;  %v190_v42 = vmul.f32 %v189_v32, %v188_v10  ;;  %v198_v43 = vmul.f32 %v197_v37, %v196_v11  ;;  %s292_s12 = sshll.u32 %s430_s11, 4  ;;  %s293_s12 = int_to_ptr.vmem [resolvable:$true] %s292_s12 }
  0x46   :  { %v175_v44 = vadd.f32 %v174_v30, %v142_v22  ;;  %v183_v45 = vadd.f32 %v182_v31, %v150_v23  ;;  %v205_v46 = vstv %s611_s22  ;;  %v213_v47 = vstv %s613_s23  ;;  %s399_s13 = scalar_lea.vmem %s293_s12, 128  ;;  %p404_p2 = scmp.lt.s32.totalorder %s293_s12, %s293_s12 }
  0x47   :  { %v206_v48 = vmul.f32 %v205_v46, %v204_v16  ;;  %v214_v49 = vmul.f32 %v213_v47, %v212_v17  ;;  %v265_v50 = vmul.f32 %v264_v39, %v489_v0  ;;  %v273_v51 = vmul.f32 %v272_v40, %v489_v0  ;;  %p400_p1 = scmp.ne.s32.totalorder %s293_s12, %s399_s13  ;;  %p405_p3 = scmp.lt.s32.totalorder %s399_s13, %s399_s13 }
  0x48   :  { %v220_v52 = vmax.f32 %v219_v12, 0.0  ;;  %v221_v53 = vstv %s615_s24  ;;  %v228_v54 = vmax.f32 %v227_v13, 0.0  ;;  %v229_v55 = vstv %s617_s26 }
  0x49   :  { %v191_v56 = vadd.f32 %v190_v42, %v159_v38  ;;  %v199_v57 = vadd.f32 %v198_v43, %v167_v41  ;;  %v207_v58 = vadd.f32 %v206_v48, %v175_v44  ;;  %v234_v59 = vstv %s621_s2  ;;  %p406_p4 = por %p405_p3, %p404_p2 }
  0x4a   :  { %v215_v39 = vadd.f32 %v214_v49, %v183_v45  ;;  %v222_v60 = vmul.f32 %v221_v53, %v220_v52  ;;  %v235_v61 = vadd.f32 %v234_v59, %v560_v33  ;;  %v242_v0 = vstv %s625_s1 }
  0x4b   :  { %v230_v40 = vmul.f32 %v229_v55, %v228_v54  ;;  %v237_v62 = vstv %s631_s28  ;;  %v243_v63 = vadd.f32 %v242_v0, %v563_v34  ;;  %v250_v1 = vstv %s629_s27  ;;  %p407_p5 = pnand %p406_p4, %p400_p1 }
  0x4c   :  { %v236_v2 = vmax.f32 %v235_v61, 0.0  ;;  %v245_v3 = vstv %s635_s29  ;;  %v251_v4 = vadd.f32 %v250_v1, %v566_v35  ;;  %v253_v5 = vstv %s637_s30 }
  0x4d   :  { %v223_v6 = vadd.f32 %v222_v60, %v191_v56  ;;  %v244_v7 = vmax.f32 %v243_v63, 0.0  ;;  %v258_v8 = vstv %s641_s6  ;;  %v266_v9 = vstv %s643_s7 }
  0x4e   :  { %v238_v10 = vmul.f32 %v237_v62, %v236_v2  ;;  %v252_v33 = vmax.f32 %v251_v4, 0.0  ;;  %v259_v11 = vadd.f32 %v258_v8, %v569_v36  ;;  %v267_v12 = vadd.f32 %v266_v9, %v265_v50 }
  0x4f   :  { %v246_v13 = vmul.f32 %v245_v3, %v244_v7  ;;  %v261_v34 = vstv %s649_s9  ;;  %v269_v14 = vstv %s651_s3  ;;  %v274_v15 = vstv %s645_s8 }
  0x50   :  { %v231_v16 = vadd.f32 %v230_v40, %v199_v57  ;;  %v254_v17 = vmul.f32 %v253_v5, %v252_v33  ;;  %v260_v18 = vmax.f32 %v259_v11, 0.0  ;;  %v268_v19 = vmax.f32 %v267_v12, 0.0 }
  0x51   :  { %v239_v35 = vadd.f32 %v238_v10, %v207_v58  ;;  %v275_v20 = vadd.f32 %v274_v15, %v273_v51  ;;  %v277_v23 = vstv %s662_s10  ;;  %v247_v24 = vadd.f32 %v246_v13, %v215_v39 }
  0x52   :  { %v262_v21 = vmul.f32 %v261_v34, %v260_v18  ;;  %v270_v22 = vmul.f32 %v269_v14, %v268_v19  ;;  %v255_v25 = vadd.f32 %v254_v17, %v223_v6  ;;  %v283_v32 = vstv %s698_s4 }
  0x53   :  { %v276_v26 = vmax.f32 %v275_v20, 0.0 }
  0x54   :  { %v263_v27 = vadd.f32 %v262_v21, %v231_v16  ;;  %v271_v28 = vadd.f32 %v270_v22, %v239_v35 }
  0x55   :  { %v278_v36 = vmul.f32 %v277_v23, %v276_v26 }
  0x56   :  { %v280_v30 = vadd.f32 %v263_v27, %v255_v25 }
  0x57   :  { %v279_v29 = vadd.f32 %v278_v36, %v247_v24 }
  0x59   :  { %v281_v31 = vadd.f32 %v279_v29, %v271_v28 }
  0x5b   :  { %v282_v37 = vadd.f32 %v281_v31, %v280_v30 }
  0x5d   :  { %v284_v38 = vadd.f32 %v283_v32, %v282_v37 }
  0x5f   :  { %285 = vst [vmem:[#allocation9] sm:$0xff] %v284_v38 }
  0x60   :  { %410 = shalt.err (!%p407_p5)
}
  0x61   :  { %s411_s16 = scalar_lea.hbm %s699_s5, 128 }
  0x62   :  { %p412_p6 = scmp.ne.s32.totalorder %s699_s5, %s411_s16  ;;  %p415_p7 = scmp.lt.u32.totalorder %s411_s16, %s699_s5 }
  0x64   :  { %p417_p8 = pnand %p415_p7, %p412_p6 }
  0x66   :  { %420 = shalt.err (!%p417_p8)
}
  0x67   :  { %295 = dma.vmem_to_hbm [thread:$0]  %s293_s12, 128, %s699_s5, [#allocation4]  }
  0x68   :  { %425 = dma.done.wait [#allocation4], 128  }
  0x69   :  { %426 = vsyncadd [#allocation4], 4294967168 }
  0x6a   :  { %299 = vsyncpa [#allocation4], 1 }
  0x6b   :  { %300 = vsyncpa [#allocation5], 1 }
  0x6c   :  { %301 = vsyncpa [#allocation7], 1 }

</bundles_post_ra>
